<compile_context>
chip_gen: v7x
topology: tpu7x:2x2x1
jax: 0.10.0
libtpu: 0.0.40
codegen_flags: <defaults>
</compile_context>

<pallas_src>
from functools import partial

import jax
import jax.numpy as jnp
from jax.experimental import pallas as pl
from jax.experimental.pallas import tpu as pltpu

_LANE = 128          # TPU vreg lane width
_MiB = 1024 * 1024


def _round_up(n, m):
    return ((n + m - 1) // m) * m


# --------------------------------------------------------------------------
# Kernel
# --------------------------------------------------------------------------
def fuzznet_kernel(x_ref, w1_ref, b1_ref, w2_ref, b2_ref, o_ref, *,
                   mxu_precision=None):
    # Hidden layer: Linear (MXU, f32 accumulate) + bias + ReLU in f32.
    x = x_ref[...].astype(w1_ref.dtype)
    h = jnp.dot(x, w1_ref[...], preferred_element_type=jnp.float32,
                precision=mxu_precision)
    h = jnp.maximum(h + b1_ref[...], 0.0)                 # (bm, hidden_p) f32
    # Output layer: Linear (MXU, f32 accumulate) + bias + Sigmoid in f32.
    y = jnp.dot(h.astype(w2_ref.dtype), w2_ref[...],
                preferred_element_type=jnp.float32,
                precision=mxu_precision)
    y = y + b2_ref[...]                                   # (bm, out_dim) f32
    # sigmoid(y) = 1 / (1 + exp(-y)); exp + approx-reciprocal both go to the
    # EUP slot, keeping the VPU free.
    sig = pl.reciprocal(1.0 + jnp.exp(-y), approx=True)
    o_ref[...] = sig.astype(o_ref.dtype)


# --------------------------------------------------------------------------
# Parameter preparation (padding / casting hoisted OUT of the per-call path)
# --------------------------------------------------------------------------
def prepare_params(w1_t, b1, w2_t, b2, *, compute_dtype=jnp.bfloat16):
    """Pad hidden dim to 128 lanes and cast weights once, up front.

    w1_t: (in_dim, hidden)   -- already transposed (in_features, out_features)
    b1:   (hidden,) or (1, hidden)
    w2_t: (hidden, out_dim)
    b2:   (out_dim,) or (1, out_dim)
    """
    in_dim, hidden = w1_t.shape
    out_dim = w2_t.shape[1]
    hidden_p = _round_up(hidden, _LANE)

    w1p = jnp.zeros((in_dim, hidden_p), compute_dtype)
    w1p = w1p.at[:, :hidden].set(w1_t.astype(compute_dtype))
    b1p = jnp.zeros((1, hidden_p), jnp.float32)
    b1p = b1p.at[:, :hidden].set(b1.astype(jnp.float32).reshape(1, -1))
    w2p = jnp.zeros((hidden_p, out_dim), compute_dtype)
    w2p = w2p.at[:hidden, :].set(w2_t.astype(compute_dtype))
    b2p = b2.astype(jnp.float32).reshape(1, -1)
    return (w1p, b1p, w2p, b2p)


# --------------------------------------------------------------------------
# VMEM budgeting helpers
# --------------------------------------------------------------------------
def _per_row_vmem_bytes(in_dim, hidden_p, out_dim, x_isz, out_isz, w_isz):
    # Streamed, double-buffered x and out tiles.
    stream = 2 * in_dim * x_isz + 2 * out_dim * out_isz
    # In-kernel intermediates: x cast, f32 h, h cast, f32 y.
    interm = in_dim * w_isz + hidden_p * 4 + hidden_p * w_isz + out_dim * 4
    return stream + interm


def _resident_vmem_bytes(in_dim, hidden_p, out_dim, w_isz):
    # Weights + biases; counted double-buffered to stay conservative.
    return 2 * ((in_dim * hidden_p + hidden_p * out_dim) * w_isz
                + (hidden_p + out_dim) * 4)


# --------------------------------------------------------------------------
# Forward wrapper
# --------------------------------------------------------------------------
def fuzznet_forward(x, params, *, block_batch=2048, x_buffers=None):
    """FuzzNet forward: sigmoid(relu(x @ W1 + b1) @ W2 + b2).

    x:      (B, in_dim)
    params: output of prepare_params() (padded/cast weights, reused per call)
    """
    w1p, b1p, w2p, b2p = params
    B, in_dim = x.shape
    hidden_p = w1p.shape[1]
    out_dim = w2p.shape[1]

    x_isz = jnp.dtype(x.dtype).itemsize
    out_isz = x_isz
    w_isz = jnp.dtype(w1p.dtype).itemsize

    # --- VMEM budget: clamp the batch tile so it fits every generation.
    try:
        vmem_phys = int(pltpu.get_tpu_info().vmem_capacity_bytes)
    except Exception:
        vmem_phys = 64 * _MiB            # conservative (v7x per-core VMEM)
    vmem_budget = min(vmem_phys // 2, 48 * _MiB)

    per_row = _per_row_vmem_bytes(in_dim, hidden_p, out_dim,
                                  x_isz, out_isz, w_isz)
    resident = _resident_vmem_bytes(in_dim, hidden_p, out_dim, w_isz)
    bm_cap = max(8, ((vmem_budget - resident) // per_row) // 8 * 8)

    # --- Batch tiling: big tiles (amortize ~0.35us/step), but keep >= 2 grid
    # steps whenever the batch allows so v7x's second TensorCore gets work.
    B8 = _round_up(B, 8)
    bm = min(block_batch, B8, bm_cap)
    if B8 >= 16:
        bm = min(bm, _round_up(pl.cdiv(B8, 2), 8))
    bm = max(8, (bm // 8) * 8)
    Bp = _round_up(B, bm)
    xp = x if Bp == B else jnp.pad(x, ((0, Bp - B), (0, 0)))
    grid = (Bp // bm,)

    # --- Raise scoped VMEM only if the per-step footprint might exceed v5e's
    # 16 MiB default (v6e/v7x default is 32 MiB).
    step_bytes = resident + bm * per_row
    vmem_limit_bytes = None
    if step_bytes > 12 * _MiB:
        vmem_limit_bytes = max(32 * _MiB,
                               min(step_bytes * 4 // 3, vmem_phys - 2 * _MiB))

    # --- Advisory cost hint for the XLA scheduler.
    cost = pl.CostEstimate(
        flops=2 * Bp * (in_dim * hidden_p + hidden_p * out_dim),
        transcendentals=2 * Bp * out_dim,          # exp + reciprocal
        bytes_accessed=(Bp * in_dim * x_isz
                        + (in_dim * hidden_p + hidden_p * out_dim) * w_isz
                        + (hidden_p + out_dim) * 4
                        + Bp * out_dim * out_isz),
    )

    # Optional deeper pipelining on the streamed tiles (off by default).
    if x_buffers is None:
        x_spec = pl.BlockSpec((bm, in_dim), lambda i: (i, 0))
        o_spec = pl.BlockSpec((bm, out_dim), lambda i: (i, 0))
    else:
        x_spec = pl.BlockSpec((bm, in_dim), lambda i: (i, 0),
                              pipeline_mode=pl.Buffered(x_buffers))
        o_spec = pl.BlockSpec((bm, out_dim), lambda i: (i, 0),
                              pipeline_mode=pl.Buffered(x_buffers))

    mxu_precision = (jax.lax.Precision.HIGHEST
                     if w1p.dtype == jnp.float32 else None)

    out_padded = pl.pallas_call(
        partial(fuzznet_kernel, mxu_precision=mxu_precision),
        out_shape=jax.ShapeDtypeStruct((Bp, out_dim), x.dtype),
        grid_spec=pl.GridSpec(
            grid=grid,
            in_specs=[
                x_spec,                                                # x tile
                pl.BlockSpec((in_dim, hidden_p), lambda i: (0, 0)),    # W1^T
                pl.BlockSpec((1, hidden_p), lambda i: (0, 0)),         # b1
                pl.BlockSpec((hidden_p, out_dim), lambda i: (0, 0)),   # W2^T
                pl.BlockSpec((1, out_dim), lambda i: (0, 0)),          # b2
            ],
            out_specs=o_spec,            # (bm, out_dim): full last dim, legal
        ),
        compiler_params=pltpu.CompilerParams(
            dimension_semantics=("parallel",),
            vmem_limit_bytes=vmem_limit_bytes,
        ),
        cost_estimate=cost,
    )(xp, w1p, b1p, w2p, b2p)

    # Only a row slice remains (ragged batches); divisible batches return as-is.
    return out_padded if Bp == B else out_padded[:B]


def init_params(key, in_dim, hidden, out_dim, dtype=jnp.float32):
    """Deterministic init mimicking torch.nn.Linear (U[-1/sqrt(fan_in), ...])."""
    k1, k2, k3, k4 = jax.random.split(key, 4)
    bound1 = 1.0 / (in_dim ** 0.5)
    bound2 = 1.0 / (hidden ** 0.5)
    # Stored already transposed: (in_features, out_features).
    w1_t = jax.random.uniform(k1, (in_dim, hidden), dtype, -bound1, bound1)
    b1 = jax.random.uniform(k2, (1, hidden), dtype, -bound1, bound1)
    w2_t = jax.random.uniform(k3, (hidden, out_dim), dtype, -bound2, bound2)
    b2 = jax.random.uniform(k4, (1, out_dim), dtype, -bound2, bound2)
    return w1_t, b1, w2_t, b2


if __name__ == "__main__":
    # Small shapes consistent with FuzzNet(in_dim, hidden_1, out_dim).
    batch, in_dim, hidden, out_dim = 512, 64, 32, 16

    key = jax.random.PRNGKey(0)
    kx, kp = jax.random.split(key)
    x = jax.random.normal(kx, (batch, in_dim), jnp.float32)
    w1_t, b1, w2_t, b2 = init_params(kp, in_dim, hidden, out_dim)

    # Pure-JAX reference.
    ref = jax.nn.sigmoid(jnp.maximum(x @ w1_t + b1, 0.0) @ w2_t + b2)

    # Pad/cast weights ONCE (hoisted off the per-call critical path).
    params_bf16 = prepare_params(w1_t, b1, w2_t, b2, compute_dtype=jnp.bfloat16)
    params_f32 = prepare_params(w1_t, b1, w2_t, b2, compute_dtype=jnp.float32)

    # bf16 MXU path (default): loose tolerance from bf16 matmul operands.
    out_bf16 = jax.block_until_ready(fuzznet_forward(x, params_bf16))
    assert out_bf16.shape == (batch, out_dim)
    assert jnp.allclose(out_bf16, ref, atol=3e-2, rtol=3e-2)

    # f32 MXU path (precision=HIGHEST pinned inside the kernel).
    out_f32 = jax.block_until_ready(fuzznet_forward(x, params_f32))
    assert out_f32.shape == (batch, out_dim)
    assert jnp.allclose(out_f32, ref, atol=2e-3, rtol=2e-3)

    # Ragged / tail batch (padding path, results row-sliced back).
    out_tail = jax.block_until_ready(fuzznet_forward(x[:37], params_bf16))
    assert out_tail.shape == (37, out_dim)
    assert jnp.allclose(out_tail, ref[:37], atol=3e-2, rtol=3e-2)

    print("KERNEL_OK")
</pallas_src>

<mosaic_0001>
module attributes {stable_mosaic.version = 11 : i64} {
  func.func @fuzznet_kernel(%arg0: i32, %arg1: memref<256x64xf32, #tpu.memory_space<vmem>>, %arg2: memref<64x128xbf16, #tpu.memory_space<vmem>>, %arg3: memref<1x128xf32, #tpu.memory_space<vmem>>, %arg4: memref<128x16xbf16, #tpu.memory_space<vmem>>, %arg5: memref<1x16xf32, #tpu.memory_space<vmem>>, %arg6: memref<256x16xf32, #tpu.memory_space<vmem>>) attributes {dimension_semantics = [#tpu.dimension_semantics<parallel>], iteration_bounds = array<i64: 2>, scalar_prefetch = 0 : i64, scratch_operands = 0 : i64, tpu.core_type = #tpu.core_type<tc>, window_params = [{transform_indices = @transform_0, window_bounds = array<i64: 256, 64>}, {pipeline_mode = #tpu.pipeline_mode<synchronous>, transform_indices = @transform_1, window_bounds = array<i64: 64, 128>}, {pipeline_mode = #tpu.pipeline_mode<synchronous>, transform_indices = @transform_2, window_bounds = array<i64: 1, 128>}, {pipeline_mode = #tpu.pipeline_mode<synchronous>, transform_indices = @transform_3, window_bounds = array<i64: 128, 16>}, {pipeline_mode = #tpu.pipeline_mode<synchronous>, transform_indices = @transform_4, window_bounds = array<i64: 1, 16>}, {transform_indices = @transform_5, window_bounds = array<i64: 256, 16>}]} {
    %c0 = arith.constant 0 : index
    %c0_0 = arith.constant 0 : index
    %0 = vector.load %arg1[%c0, %c0_0] : memref<256x64xf32, #tpu.memory_space<vmem>>, vector<256x64xf32>
    %1 = arith.truncf %0 : vector<256x64xf32> to vector<256x64xbf16>
    %c0_1 = arith.constant 0 : index
    %c0_2 = arith.constant 0 : index
    %2 = vector.load %arg2[%c0_1, %c0_2] : memref<64x128xbf16, #tpu.memory_space<vmem>>, vector<64x128xbf16>
    %cst = arith.constant dense<0.000000e+00> : vector<256x128xf32>
    %3 = tpu.matmul %1, %2, %cst {dimension_numbers = #tpu.dot_dimension_numbers<[1], [0], [0], [1], [0, 0, 1, 1], [], []>} : vector<256x64xbf16>, vector<64x128xbf16>, vector<256x128xf32> -> vector<256x128xf32>
    %c0_3 = arith.constant 0 : index
    %c0_4 = arith.constant 0 : index
    %4 = vector.load %arg3[%c0_3, %c0_4] : memref<1x128xf32, #tpu.memory_space<vmem>>, vector<1x128xf32>
    %5 = vector.broadcast %4 : vector<1x128xf32> to vector<256x128xf32>
    %6 = arith.addf %3, %5 : vector<256x128xf32>
    %cst_5 = arith.constant 0.000000e+00 : f32
    %7 = vector.broadcast %cst_5 : f32 to vector<256x128xf32>
    %8 = arith.maximumf %6, %7 : vector<256x128xf32>
    %9 = arith.truncf %8 : vector<256x128xf32> to vector<256x128xbf16>
    %c0_6 = arith.constant 0 : index
    %c0_7 = arith.constant 0 : index
    %10 = vector.load %arg4[%c0_6, %c0_7] : memref<128x16xbf16, #tpu.memory_space<vmem>>, vector<128x16xbf16>
    %cst_8 = arith.constant dense<0.000000e+00> : vector<256x16xf32>
    %11 = tpu.matmul %9, %10, %cst_8 {dimension_numbers = #tpu.dot_dimension_numbers<[1], [0], [0], [1], [0, 0, 1, 1], [], []>} : vector<256x128xbf16>, vector<128x16xbf16>, vector<256x16xf32> -> vector<256x16xf32>
    %c0_9 = arith.constant 0 : index
    %c0_10 = arith.constant 0 : index
    %12 = vector.load %arg5[%c0_9, %c0_10] : memref<1x16xf32, #tpu.memory_space<vmem>>, vector<1x16xf32>
    %13 = vector.broadcast %12 : vector<1x16xf32> to vector<256x16xf32>
    %14 = arith.addf %11, %13 : vector<256x16xf32>
    %cst_11 = arith.constant 0.000000e+00 : f32
    %15 = vector.broadcast %cst_11 : f32 to vector<256x16xf32>
    %16 = arith.subf %15, %14 : vector<256x16xf32>
    %17 = math.exp %16 : vector<256x16xf32>
    %cst_12 = arith.constant 1.000000e+00 : f32
    %18 = vector.broadcast %cst_12 : f32 to vector<256x16xf32>
    %19 = arith.addf %18, %17 : vector<256x16xf32>
    %20 = tpu.reciprocal %19 {approx = true} : vector<256x16xf32> -> vector<256x16xf32>
    %c0_13 = arith.constant 0 : index
    %c0_14 = arith.constant 0 : index
    %21 = vector.load %arg6[%c0_13, %c0_14] : memref<256x16xf32, #tpu.memory_space<vmem>>, vector<256x16xf32>
    tpu.vector_store %arg6[%c0_13, %c0_14], %20 {strides = array<i32>} : memref<256x16xf32, #tpu.memory_space<vmem>>, vector<256x16xf32>,
    return
  }
  func.func @transform_0(%arg0: i32) -> (i32, i32) {
    %c0_i32 = arith.constant 0 : i32
    %c0_i32_0 = arith.constant 0 : i32
    return %arg0, %c0_i32 : i32, i32
  }
  func.func @transform_1(%arg0: i32) -> (i32, i32) {
    %c0_i32 = arith.constant 0 : i32
    %c0_i32_0 = arith.constant 0 : i32
    %c0_i32_1 = arith.constant 0 : i32
    return %c0_i32, %c0_i32_0 : i32, i32
  }
  func.func @transform_2(%arg0: i32) -> (i32, i32) {
    %c0_i32 = arith.constant 0 : i32
    %c0_i32_0 = arith.constant 0 : i32
    %c0_i32_1 = arith.constant 0 : i32
    return %c0_i32, %c0_i32_0 : i32, i32
  }
  func.func @transform_3(%arg0: i32) -> (i32, i32) {
    %c0_i32 = arith.constant 0 : i32
    %c0_i32_0 = arith.constant 0 : i32
    %c0_i32_1 = arith.constant 0 : i32
    return %c0_i32, %c0_i32_0 : i32, i32
  }
  func.func @transform_4(%arg0: i32) -> (i32, i32) {
    %c0_i32 = arith.constant 0 : i32
    %c0_i32_0 = arith.constant 0 : i32
    %c0_i32_1 = arith.constant 0 : i32
    return %c0_i32, %c0_i32_0 : i32, i32
  }
  func.func @transform_5(%arg0: i32) -> (i32, i32) {
    %c0_i32 = arith.constant 0 : i32
    %c0_i32_0 = arith.constant 0 : i32
    return %arg0, %c0_i32 : i32, i32
  }
}

</mosaic_0001>

<bundles_post_ra>
// kernel: tpu_custom_call.1
= control target key start
LH: loop header
LB: loop body
LE: loop exit
PB: predicated region body
PF: predicated region fallthrough
CT: control target
= control target key end

     0   :  { %s1430_s18 = smov 0   ;;  %s1680_s0 = inlined_call_operand.vmem [shape: f32[512,64], index: 0, kind: input, shape index: {}]   ;;  %s1681_s1 = inlined_call_operand.vmem [shape: bf16[64,128], index: 1, kind: input, shape index: {}]   ;;  %s1682_s2 = inlined_call_operand.vmem [shape: f32[1,128], index: 2, kind: input, shape index: {}]   ;;  %s1683_s3 = inlined_call_operand.vmem [shape: bf16[128,16], index: 3, kind: input, shape index: {}]   ;;  %s1684_s4 = inlined_call_operand.vmem [shape: f32[1,16], index: 4, kind: input, shape index: {}]   ;;  %s1685_s5 = inlined_call_operand.vmem [shape: f32[512,16], index: 5, kind: output, shape index: {}]  }
   0x1 LB: > { %s1055_s19 = sadd.s32 4294967295, %s1398_s18   ;;  %p1059_p0 = scmp.ge.s32.totalorder %s1398_s18, 1  ;;  %s1398_s18 = sphi %s1430_s18, %s15_s18  }
   0x2   : > { %p188_p1 = scmp.lt.s32.totalorder %s1398_s18, 3 }
   0x4   : > { %p189_p2 = pnand %p1059_p0, %p188_p1 }
   0x5   : > { %v1252_v0 = vld [vmem:[%s1681_s1] sm:$0xff] (!%p189_p2)   ;;  %s1060_s22 = sshll.u32 (!%p189_p2), %s1055_s19, 5  ;;  %v1253_v1 = vld [vmem:[%s1681_s1 + $0x8] sm:$0xff] (!%p189_p2)   ;;  %v1254_v2 = vld [vmem:[%s1681_s1 + $0x10] sm:$0xff] (!%p189_p2)   ;;  %vm316_vm0 = vcmask (!%p189_p2), 523264   ;;  %vm966_vm1 = vcmask (!%p189_p2), 130048  }
   0x6   : > { %192 = sbr.rel (%p189_p2) target bundleno = 549 (0x225), region = 40  ;;  %p217_p3 = scmp.lt.s32.totalorder (!%p189_p2), %s1060_s22, 63  ;;  %1140 = vmatprep.subr.bf16.mxu0 (!%p189_p2), %v1252_v0  ;;  %v1256_v3 = vld [vmem:[%s1683_s3] sm:$0xff] (!%p189_p2)   ;;  %v1257_v4 = vld [vmem:[%s1683_s3 + $0x8] sm:$0xff] (!%p189_p2)   ;;  %v1255_v7 = vld [vmem:[%s1681_s1 + $0x18] sm:$0xff] (!%p189_p2)  }
   0x7   : > { %1141 = vmatpush3.bf16.msra.mxu0 (!%p189_p2), %v1252_v0  ;;  %1228 = vmatprep.subr.bf16.mxu1 (!%p189_p2), %v1256_v3  ;;  %v1258_v9 = vld [vmem:[%s1683_s3 + $0x10] sm:$0xff] (!%p189_p2)   ;;  %v1259_v19 = vld [vmem:[%s1683_s3 + $0x18] sm:$0xff] (!%p189_p2)   ;;  %v1260_v21 = vld [vmem:[%s1683_s3 + $0x20] sm:$0xff] (!%p189_p2)  }
   0x8   : > { %1142 = vmatprep.subr.bf16.mxu0 (!%p189_p2), %v1253_v1  ;;  %1236 = vmatpush3.bf16.msra.mxu1 (!%p189_p2), %v1256_v3  ;;  %v1261_v24 = vld [vmem:[%s1683_s3 + $0x28] sm:$0xff] (!%p189_p2)   ;;  %v1262_v58 = vld [vmem:[%s1683_s3 + $0x30] sm:$0xff] (!%p189_p2)   ;;  %v1263_v59 = vld [vmem:[%s1683_s3 + $0x38] sm:$0xff] (!%p189_p2)  }
   0x9   : > { %1229 = vmatprep.subr.bf16.mxu1 (!%p189_p2), %v1257_v4  ;;  %v1535_v60 = vld [vmem:[%s1682_s2] ss:$0 sm:$0xff] (!%p189_p2) }
   0xb   : > { %1143 = vmatpush3.bf16.msra.mxu0 (!%p189_p2), %v1253_v1 }
   0xc   : > { %1144 = vmatprep.subr.bf16.mxu0 (!%p189_p2), %v1254_v2  ;;  %1237 = vmatpush3.bf16.msra.mxu1 (!%p189_p2), %v1257_v4 }
   0xd   : > { %s1687_s22 = smov (!%p217_p3, %s1060_s22), 63  ;;  %1230 = vmatprep.subr.bf16.mxu1 %v1258_v9 }
   0xe   : > { %s1061_s29 = sshll.u32 %s1687_s22, 3 }
   0xf   : > { %s1458_s7 = scalar_lea.vmem %s1680_s0, %s1061_s29  ;;  %1145 = vmatpush3.bf16.msra.mxu0 %v1254_v2  ;;  %s1594_s8 = scalar_lea.vmem %s1685_s5, %s1061_s29 }
  0x10   : > { %v229_v5 = vld [vmem:[%s1458_s7] sm:$0xff]  ;;  %v230_v6 = vld [vmem:[%s1458_s7 + $0x8] sm:$0xff]  ;;  %v231_v10 = vld [vmem:[%s1458_s7 + $0x10] sm:$0xff]  ;;  %1146 = vmatprep.subr.bf16.mxu0 %v1255_v7  ;;  %1238 = vmatpush3.bf16.msra.mxu1 %v1258_v9 }
  0x11   : > { %v261_v8 = vpack.c.bf16 %v230_v6, %v229_v5  ;;  %v232_v11 = vld [vmem:[%s1458_s7 + $0x18] sm:$0xff]  ;;  %v233_v12 = vld [vmem:[%s1458_s7 + $0x20] sm:$0xff]  ;;  %v234_v13 = vld [vmem:[%s1458_s7 + $0x28] sm:$0xff]  ;;  %1231 = vmatprep.subr.bf16.mxu1 %v1259_v19 }
  0x12   : > { %v262_v14 = vpack.c.bf16 %v232_v11, %v231_v10  ;;  %v263_v15 = vpack.c.bf16 %v234_v13, %v233_v12  ;;  %v235_v16 = vld [vmem:[%s1458_s7 + $0x30] sm:$0xff]  ;;  %v236_v17 = vld [vmem:[%s1458_s7 + $0x38] sm:$0xff]  ;;  %v237_v18 = vld [vmem:[%s1458_s7 + $0x40] sm:$0xff] }
  0x13   : > { %1148 = vmatprep.mubr.msk.bf16.mxu0 %vm316_vm0, %v261_v8  ;;  %1147 = vmatpush3.bf16.msra.mxu0 %v1255_v7  ;;  %v238_v20 = vld [vmem:[%s1458_s7 + $0x48] sm:$0xff]  ;;  %v264_v22 = vpack.c.bf16 %v236_v17, %v235_v16  ;;  %v239_v25 = vld [vmem:[%s1458_s7 + $0x50] sm:$0xff]  ;;  %v240_v26 = vld [vmem:[%s1458_s7 + $0x58] sm:$0xff] }
  0x14   : > { %1180 = vmatprep.subr.bf16.mxu0 %v1256_v3  ;;  %1239 = vmatpush3.bf16.msra.mxu1 %v1259_v19  ;;  %v265_v23 = vpack.c.bf16 %v238_v20, %v237_v18  ;;  %v241_v27 = vld [vmem:[%s1458_s7 + $0x60] sm:$0xff]  ;;  %v242_v28 = vld [vmem:[%s1458_s7 + $0x68] sm:$0xff]  ;;  %v266_v29 = vpack.c.bf16 %v240_v26, %v239_v25  ;;  %v243_v31 = vld [vmem:[%s1458_s7 + $0x70] sm:$0xff] }
  0x15   : > { %1232 = vmatprep.subr.bf16.mxu1 %v1260_v21  ;;  %v267_v30 = vpack.c.bf16 %v242_v28, %v241_v27  ;;  %v244_v32 = vld [vmem:[%s1458_s7 + $0x78] sm:$0xff]  ;;  %v245_v33 = vld [vmem:[%s1458_s7 + $0x80] sm:$0xff]  ;;  %v246_v34 = vld [vmem:[%s1458_s7 + $0x88] sm:$0xff] }
  0x16   : > { %1149 = vmatmul.mubr.msk.bf16.vlgmr.msra.gmra.mrb[0].mxu0 %vm316_vm0, %v262_v14  ;;  %v268_v35 = vpack.c.bf16 %v244_v32, %v243_v31  ;;  %v269_v36 = vpack.c.bf16 %v246_v34, %v245_v33  ;;  %v247_v37 = vld [vmem:[%s1458_s7 + $0x90] sm:$0xff]  ;;  %v248_v38 = vld [vmem:[%s1458_s7 + $0x98] sm:$0xff]  ;;  %v249_v39 = vld [vmem:[%s1458_s7 + $0xa0] sm:$0xff] }
  0x17   : > { %1152 = vmatprep.mubr.msk.bf16.mxu0 %vm316_vm0, %v263_v15  ;;  %1181 = vmatpush3.bf16.msra.mxu0 %v1256_v3  ;;  %v250_v40 = vld [vmem:[%s1458_s7 + $0xa8] sm:$0xff]  ;;  %v270_v41 = vpack.c.bf16 %v248_v38, %v247_v37  ;;  %v251_v43 = vld [vmem:[%s1458_s7 + $0xb0] sm:$0xff]  ;;  %v252_v44 = vld [vmem:[%s1458_s7 + $0xb8] sm:$0xff] }
  0x18   : > { %1182 = vmatprep.subr.bf16.mxu0 %v1257_v4  ;;  %1240 = vmatpush3.bf16.msra.mxu1 %v1260_v21  ;;  %v271_v42 = vpack.c.bf16 %v250_v40, %v249_v39  ;;  %v253_v45 = vld [vmem:[%s1458_s7 + $0xc0] sm:$0xff]  ;;  %v254_v46 = vld [vmem:[%s1458_s7 + $0xc8] sm:$0xff]  ;;  %v272_v47 = vpack.c.bf16 %v252_v44, %v251_v43  ;;  %v255_v49 = vld [vmem:[%s1458_s7 + $0xd0] sm:$0xff] }
  0x19   : > { %1233 = vmatprep.subr.bf16.mxu1 %v1261_v24  ;;  %v273_v48 = vpack.c.bf16 %v254_v46, %v253_v45  ;;  %v256_v50 = vld [vmem:[%s1458_s7 + $0xd8] sm:$0xff]  ;;  %v257_v51 = vld [vmem:[%s1458_s7 + $0xe0] sm:$0xff]  ;;  %v258_v52 = vld [vmem:[%s1458_s7 + $0xe8] sm:$0xff] }
  0x1a   : > { %v274_v53 = vpack.c.bf16 %v256_v50, %v255_v49  ;;  %v275_v54 = vpack.c.bf16 %v258_v52, %v257_v51  ;;  %v259_v55 = vld [vmem:[%s1458_s7 + $0xf0] sm:$0xff]  ;;  %v260_v56 = vld [vmem:[%s1458_s7 + $0xf8] sm:$0xff] }
  0x1b   : > { %1183 = vmatpush3.bf16.msra.mxu0 %v1257_v4  ;;  %v276_v57 = vpack.c.bf16 %v260_v56, %v259_v55 }
  0x1c   : > { %1184 = vmatprep.subr.bf16.mxu0 %v1258_v9  ;;  %1241 = vmatpush3.bf16.msra.mxu1 %v1261_v24 }
  0x1d   : > { %1234 = vmatprep.subr.bf16.mxu1 %v1262_v58 }
  0x1e   : > { %1153 = vmatmul.mubr.msk.bf16.gmra.mrb[4].mxu0 %vm316_vm0, %v264_v22 }
  0x1f   : > { %1156 = vmatprep.mubr.msk.bf16.mxu0 %vm316_vm0, %v265_v23  ;;  %1185 = vmatpush3.bf16.msra.mxu0 %v1258_v9 }
  0x20   : > { %1186 = vmatprep.subr.bf16.mxu0 %v1259_v19  ;;  %1242 = vmatpush3.bf16.msra.mxu1 %v1262_v58 }
  0x21   : > { %1235 = vmatprep.subr.bf16.mxu1 %v1263_v59 }
  0x23   : > { %1187 = vmatpush3.bf16.msra.mxu0 %v1259_v19 }
  0x24   : > { %1188 = vmatprep.subr.bf16.mxu0 %v1260_v21  ;;  %1243 = vmatpush3.bf16.msra.mxu1 %v1263_v59 }
  0x26   : > { %1157 = vmatmul.mubr.msk.bf16.gmra.mrb[8].mxu0 %vm316_vm0, %v266_v29 }
  0x27   : > { %1160 = vmatprep.mubr.msk.bf16.mxu0 %vm316_vm0, %v267_v30  ;;  %1189 = vmatpush3.bf16.msra.mxu0 %v1260_v21 }
  0x28   : > { %1190 = vmatprep.subr.bf16.mxu0 %v1261_v24 }
  0x2b   : > { %1191 = vmatpush3.bf16.msra.mxu0 %v1261_v24 }
  0x2c   : > { %1192 = vmatprep.subr.bf16.mxu0 %v1262_v58 }
  0x2e   : > { %1161 = vmatmul.mubr.msk.bf16.gmra.mrb[12].mxu0 %vm316_vm0, %v268_v35 }
  0x2f   : > { %1164 = vmatprep.mubr.msk.bf16.mxu0 %vm316_vm0, %v269_v36  ;;  %1193 = vmatpush3.bf16.msra.mxu0 %v1262_v58 }
  0x30   : > { %1194 = vmatprep.subr.bf16.mxu0 %v1263_v59 }
  0x33   : > { %1195 = vmatpush3.bf16.msra.mxu0 %v1263_v59 }
  0x36   : > { %1165 = vmatmul.mubr.msk.bf16.gmra.mrb[16].mxu0 %vm316_vm0, %v270_v41 }
  0x37   : > { %1168 = vmatprep.mubr.msk.bf16.mxu0 %vm316_vm0, %v271_v42 }
  0x3e   : > { %1169 = vmatmul.mubr.msk.bf16.gmra.mrb[20].mxu0 %vm316_vm0, %v272_v47 }
  0x3f   : > { %1172 = vmatprep.mubr.msk.bf16.mxu0 %vm316_vm0, %v273_v48 }
  0x46   : > { %1173 = vmatmul.mubr.msk.bf16.gmra.mrb[24].mxu0 %vm316_vm0, %v274_v53 }
  0x47   : > { %1176 = vmatprep.mubr.msk.bf16.mxu0 %vm316_vm0, %v275_v54 }
  0x4e   : > { %1177 = vmatmul.mubr.msk.bf16.gmra.mrb[28].mxu0 %vm316_vm0, %v276_v57 }
  0xe9   : > { %v1150_v61 = vpop.f32.mrb[0].mxu0 }
  0xea   : > { %v408_v62 = vadd.f32 %v1150_v61, %v1535_v60  ;;  %v399_v63 = vpop.f32.mrb[1].mxu0 }
  0xeb   : > { %v400_v0 = vadd.f32 %v1535_v60, %v399_v63  ;;  %v1151_v1 = vpop.f32.mrb[2].mxu0 }
  0xec   : > { %v411_v2 = vadd.f32 %v1151_v1, %v1535_v60  ;;  %v402_v3 = vpop.f32.mrb[3].mxu0  ;;  %v528_v5 = vmax.f32 %v408_v62, 0.0 }
  0xed   : > { %v403_v4 = vadd.f32 %v1535_v60, %v402_v3  ;;  %v526_v7 = vmax.f32 %v400_v0, 0.0 }
  0xee   : > { %v529_v6 = vmax.f32 %v411_v2, 0.0 }
  0xef   : > { %v527_v8 = vmax.f32 %v403_v4, 0.0 }
  0xf0   : > { %v559_v9 = vpack.c.bf16 %v529_v6, %v528_v5 }
  0xf1   : > { %v558_v10 = vpack.c.bf16 %v527_v8, %v526_v7  ;;  %v1154_v11 = vpop.f32.mrb[4].mxu0 }
  0xf2   : > { %v424_v12 = vadd.f32 %v1154_v11, %v1535_v60  ;;  %v415_v13 = vpop.f32.mrb[5].mxu0 }
  0xf3   : > { %v416_v14 = vadd.f32 %v1535_v60, %v415_v13  ;;  %v1155_v15 = vpop.f32.mrb[6].mxu0  ;;  %1196 = vmatprep.mubr.bf16.mxu0 %v558_v10 }
  0xf4   : > { %v427_v16 = vadd.f32 %v1155_v15, %v1535_v60  ;;  %v418_v17 = vpop.f32.mrb[7].mxu0  ;;  %1197 = vmatmul.mubr.bf16.vlgmr.msra.gmra.mrb[32].mxu0 %v559_v9  ;;  %v532_v19 = vmax.f32 %v424_v12, 0.0 }
  0xf5   : > { %v419_v18 = vadd.f32 %v1535_v60, %v418_v17  ;;  %v530_v21 = vmax.f32 %v416_v14, 0.0 }
  0xf6   : > { %v533_v20 = vmax.f32 %v427_v16, 0.0 }
  0xf7   : > { %v531_v22 = vmax.f32 %v419_v18, 0.0 }
  0xf8   : > { %v561_v23 = vpack.c.bf16 %v533_v20, %v532_v19 }
  0xf9   : > { %v1158_v24 = vpop.f32.mrb[8].mxu0  ;;  %v560_v25 = vpack.c.bf16 %v531_v22, %v530_v21 }
  0xfa   : > { %v440_v26 = vadd.f32 %v1158_v24, %v1535_v60  ;;  %v431_v27 = vpop.f32.mrb[9].mxu0 }
  0xfb   : > { %v432_v28 = vadd.f32 %v1535_v60, %v431_v27  ;;  %v1159_v29 = vpop.f32.mrb[10].mxu0  ;;  %1200 = vmatprep.mubr.bf16.mxu1 %v560_v25 }
  0xfc   : > { %v443_v30 = vadd.f32 %v1159_v29, %v1535_v60  ;;  %v434_v31 = vpop.f32.mrb[11].mxu0  ;;  %1201 = vmatmul.mubr.bf16.vlgmr.msra.gmra.mrb[0].mxu1 %v561_v23  ;;  %v536_v33 = vmax.f32 %v440_v26, 0.0 }
  0xfd   : > { %v435_v32 = vadd.f32 %v1535_v60, %v434_v31  ;;  %v534_v35 = vmax.f32 %v432_v28, 0.0 }
  0xfe   : > { %v537_v34 = vmax.f32 %v443_v30, 0.0 }
  0xff   : > { %v535_v36 = vmax.f32 %v435_v32, 0.0 }
 0x100   : > { %v563_v37 = vpack.c.bf16 %v537_v34, %v536_v33 }
 0x101   : > { %v562_v38 = vpack.c.bf16 %v535_v36, %v534_v35  ;;  %v1162_v39 = vpop.f32.mrb[12].mxu0 }
 0x102   : > { %v456_v40 = vadd.f32 %v1162_v39, %v1535_v60  ;;  %v447_v41 = vpop.f32.mrb[13].mxu0 }
 0x103   : > { %v448_v42 = vadd.f32 %v1535_v60, %v447_v41  ;;  %v1163_v43 = vpop.f32.mrb[14].mxu0  ;;  %1204 = vmatprep.mubr.bf16.mxu1 %v562_v38 }
 0x104   : > { %v459_v44 = vadd.f32 %v1163_v43, %v1535_v60  ;;  %v450_v45 = vpop.f32.mrb[15].mxu0  ;;  %1205 = vmatmul.mubr.bf16.gmra.mrb[4].mxu1 %v563_v37  ;;  %v540_v47 = vmax.f32 %v456_v40, 0.0 }
 0x105   : > { %v451_v46 = vadd.f32 %v1535_v60, %v450_v45  ;;  %v538_v49 = vmax.f32 %v448_v42, 0.0 }
 0x106   : > { %v541_v48 = vmax.f32 %v459_v44, 0.0 }
 0x107   : > { %v539_v50 = vmax.f32 %v451_v46, 0.0  ;;  %v1572_v46 = vld [vmem:[%s1684_s4] ss:$0 sm:$0xff] }
 0x108   : > { %v565_v51 = vpack.c.bf16 %v541_v48, %v540_v47 }
 0x109   : > { %v564_v52 = vpack.c.bf16 %v539_v50, %v538_v49  ;;  %v1166_v53 = vpop.f32.mrb[16].mxu0 }
 0x10a   : > { %v472_v54 = vadd.f32 %v1166_v53, %v1535_v60  ;;  %v463_v55 = vpop.f32.mrb[17].mxu0 }
 0x10b   : > { %v464_v56 = vadd.f32 %v1535_v60, %v463_v55  ;;  %v1167_v57 = vpop.f32.mrb[18].mxu0  ;;  %1208 = vmatprep.mubr.bf16.mxu1 %v564_v52 }
 0x10c   : > { %v475_v58 = vadd.f32 %v1167_v57, %v1535_v60  ;;  %v466_v59 = vpop.f32.mrb[19].mxu0  ;;  %1209 = vmatmul.mubr.bf16.gmra.mrb[8].mxu1 %v565_v51  ;;  %v544_v62 = vmax.f32 %v472_v54, 0.0 }
 0x10d   : > { %v467_v61 = vadd.f32 %v1535_v60, %v466_v59  ;;  %v542_v0 = vmax.f32 %v464_v56, 0.0 }
 0x10e   : > { %v545_v63 = vmax.f32 %v475_v58, 0.0 }
 0x10f   : > { %v543_v1 = vmax.f32 %v467_v61, 0.0 }
 0x110   : > { %v567_v2 = vpack.c.bf16 %v545_v63, %v544_v62 }
 0x111   : > { %v566_v3 = vpack.c.bf16 %v543_v1, %v542_v0  ;;  %v1170_v4 = vpop.f32.mrb[20].mxu0 }
 0x112   : > { %v488_v5 = vadd.f32 %v1170_v4, %v1535_v60  ;;  %v479_v6 = vpop.f32.mrb[21].mxu0 }
 0x113   : > { %v480_v7 = vadd.f32 %v1535_v60, %v479_v6  ;;  %v1171_v8 = vpop.f32.mrb[22].mxu0  ;;  %1212 = vmatprep.mubr.bf16.mxu1 %v566_v3 }
 0x114   : > { %v491_v9 = vadd.f32 %v1171_v8, %v1535_v60  ;;  %v482_v10 = vpop.f32.mrb[23].mxu0  ;;  %1213 = vmatmul.mubr.bf16.gmra.mrb[12].mxu1 %v567_v2  ;;  %v548_v12 = vmax.f32 %v488_v5, 0.0 }
 0x115   : > { %v483_v11 = vadd.f32 %v1535_v60, %v482_v10  ;;  %v546_v14 = vmax.f32 %v480_v7, 0.0 }
 0x116   : > { %v549_v13 = vmax.f32 %v491_v9, 0.0 }
 0x117   : > { %v547_v15 = vmax.f32 %v483_v11, 0.0 }
 0x118   : > { %v569_v16 = vpack.c.bf16 %v549_v13, %v548_v12 }
 0x119   : > { %v568_v17 = vpack.c.bf16 %v547_v15, %v546_v14  ;;  %v1174_v18 = vpop.f32.mrb[24].mxu0 }
 0x11a   : > { %v504_v19 = vadd.f32 %v1174_v18, %v1535_v60  ;;  %v495_v20 = vpop.f32.mrb[25].mxu0 }
 0x11b   : > { %v496_v21 = vadd.f32 %v1535_v60, %v495_v20  ;;  %v1175_v22 = vpop.f32.mrb[26].mxu0  ;;  %1216 = vmatprep.mubr.bf16.mxu1 %v568_v17 }
 0x11c   : > { %v507_v23 = vadd.f32 %v1175_v22, %v1535_v60  ;;  %v498_v24 = vpop.f32.mrb[27].mxu0  ;;  %1217 = vmatmul.mubr.bf16.gmra.mrb[16].mxu1 %v569_v16  ;;  %v552_v26 = vmax.f32 %v504_v19, 0.0 }
 0x11d   : > { %v499_v25 = vadd.f32 %v1535_v60, %v498_v24  ;;  %v550_v28 = vmax.f32 %v496_v21, 0.0 }
 0x11e   : > { %v553_v27 = vmax.f32 %v507_v23, 0.0 }
 0x11f   : > { %v551_v29 = vmax.f32 %v499_v25, 0.0 }
 0x120   : > { %v571_v30 = vpack.c.bf16 %v553_v27, %v552_v26 }
 0x121   : > { %v570_v31 = vpack.c.bf16 %v551_v29, %v550_v28  ;;  %v1178_v32 = vpop.f32.mrb[28].mxu0 }
 0x122   : > { %v520_v33 = vadd.f32 %v1178_v32, %v1535_v60  ;;  %v511_v34 = vpop.f32.mrb[29].mxu0 }
 0x123   : > { %v512_v35 = vadd.f32 %v1535_v60, %v511_v34  ;;  %v1179_v36 = vpop.f32.mrb[30].mxu0  ;;  %1220 = vmatprep.mubr.bf16.mxu1 %v570_v31 }
 0x124   : > { %v523_v37 = vadd.f32 %v1179_v36, %v1535_v60  ;;  %v514_v38 = vpop.f32.mrb[31].mxu0  ;;  %1221 = vmatmul.mubr.bf16.gmra.mrb[20].mxu1 %v571_v30  ;;  %v556_v40 = vmax.f32 %v520_v33, 0.0 }
 0x125   : > { %v515_v39 = vadd.f32 %v1535_v60, %v514_v38  ;;  %v554_v42 = vmax.f32 %v512_v35, 0.0 }
 0x126   : > { %v557_v41 = vmax.f32 %v523_v37, 0.0 }
 0x127   : > { %v555_v43 = vmax.f32 %v515_v39, 0.0 }
 0x128   : > { %v573_v44 = vpack.c.bf16 %v557_v41, %v556_v40 }
 0x129   : > { %v572_v45 = vpack.c.bf16 %v555_v43, %v554_v42 }
 0x12b   : > { %1224 = vmatprep.mubr.bf16.mxu1 %v572_v45 }
 0x12c   : > { %1225 = vmatmul.mubr.bf16.gmra.mrb[24].mxu1 %v573_v44 }
 0x1c7   : > { %v1198_v47 = vpop.f32.mrb[32].mxu0 }
 0x1c8   : > { %v688_v48 = vadd.f32 %v1198_v47, %v1572_v46  ;;  %v679_v49 = vpop.f32.mrb[33].mxu0 }
 0x1c9   : > { %v680_v50 = vadd.f32 %v1572_v46, %v679_v49  ;;  %v1199_v60 = vpop.f32.mrb[34].mxu0 }
 0x1ca   : > { %v808_v51 = vsub.f32 0.0, %v688_v48  ;;  %v691_v52 = vadd.f32 %v1199_v60, %v1572_v46  ;;  %v682_v53 = vpop.f32.mrb[35].mxu0 }
 0x1cb   : > { %v806_v54 = vsub.f32 0.0, %v680_v50  ;;  %v683_v55 = vadd.f32 %v1572_v46, %v682_v53 }
 0x1cc   : > { %v842_v56 = vmul.f32 1.442695, %v808_v51  ;;  %v809_v57 = vsub.f32 0.0, %v691_v52 }
 0x1cd   : > { %v838_v58 = vmul.f32 1.442695, %v806_v54  ;;  %v807_v59 = vsub.f32 0.0, %v683_v55 }
 0x1ce   : > { %1264 = vpow2.f32 %v842_v56  ;;  %v844_v61 = vmul.f32 1.442695, %v809_v57 }
 0x1cf   : > { %1266 = vpow2.f32 %v838_v58  ;;  %v840_v62 = vmul.f32 1.442695, %v807_v59  ;;  %v1202_v63 = vpop.f32.mrb[0].mxu1 }
 0x1d0   : > { %1268 = vpow2.f32 %v844_v61  ;;  %v704_v0 = vadd.f32 %v1202_v63, %v1572_v46  ;;  %v695_v1 = vpop.f32.mrb[1].mxu1 }
 0x1d1   : > { %1270 = vpow2.f32 %v840_v62  ;;  %v696_v2 = vadd.f32 %v1572_v46, %v695_v1  ;;  %v1203_v3 = vpop.f32.mrb[2].mxu1 }
 0x1d2   : > { %v812_v4 = vsub.f32 0.0, %v704_v0  ;;  %v707_v5 = vadd.f32 %v1203_v3, %v1572_v46  ;;  %v698_v6 = vpop.f32.mrb[3].mxu1 }
 0x1d3   : > { %v810_v7 = vsub.f32 0.0, %v696_v2  ;;  %v699_v8 = vadd.f32 %v1572_v46, %v698_v6 }
 0x1d4   : > { %v850_v9 = vmul.f32 1.442695, %v812_v4  ;;  %v813_v10 = vsub.f32 0.0, %v707_v5 }
 0x1d5   : > { %v846_v11 = vmul.f32 1.442695, %v810_v7  ;;  %v811_v12 = vsub.f32 0.0, %v699_v8 }
 0x1d6   : > { %1272 = vpow2.f32 %v850_v9  ;;  %v852_v13 = vmul.f32 1.442695, %v813_v10 }
 0x1d7   : > { %1274 = vpow2.f32 %v846_v11  ;;  %v848_v14 = vmul.f32 1.442695, %v811_v12  ;;  %v1206_v15 = vpop.f32.mrb[4].mxu1 }
 0x1d8   : > { %v1265_v16 = vpop.eup %1264  ;;  %1276 = vpow2.f32 %v852_v13  ;;  %v720_v17 = vadd.f32 %v1206_v15, %v1572_v46  ;;  %v711_v18 = vpop.f32.mrb[5].mxu1 }
 0x1d9   : > { %v1267_v19 = vpop.eup %1266  ;;  %v904_v20 = vadd.f32 1.0, %v1265_v16  ;;  %1278 = vpow2.f32 %v848_v14  ;;  %v712_v21 = vadd.f32 %v1572_v46, %v711_v18  ;;  %v1207_v22 = vpop.f32.mrb[6].mxu1 }
 0x1da   : > { %v1269_v23 = vpop.eup %1268  ;;  %v902_v24 = vadd.f32 1.0, %v1267_v19  ;;  %v816_v25 = vsub.f32 0.0, %v720_v17  ;;  %v723_v26 = vadd.f32 %v1207_v22, %v1572_v46  ;;  %v714_v27 = vpop.f32.mrb[7].mxu1 }
 0x1db   : > { %v1271_v28 = vpop.eup %1270  ;;  %1280 = vrcp.f32 %v904_v20  ;;  %v905_v29 = vadd.f32 1.0, %v1269_v23  ;;  %v814_v30 = vsub.f32 0.0, %v712_v21  ;;  %v715_v31 = vadd.f32 %v1572_v46, %v714_v27 }
 0x1dc   : > { %1282 = vrcp.f32 %v902_v24  ;;  %v903_v32 = vadd.f32 1.0, %v1271_v28  ;;  %v858_v33 = vmul.f32 1.442695, %v816_v25  ;;  %v817_v34 = vsub.f32 0.0, %v723_v26 }
 0x1dd   : > { %1284 = vrcp.f32 %v905_v29  ;;  %v854_v35 = vmul.f32 1.442695, %v814_v30  ;;  %v815_v36 = vsub.f32 0.0, %v715_v31 }
 0x1de   : > { %1286 = vrcp.f32 %v903_v32  ;;  %v860_v37 = vmul.f32 1.442695, %v817_v34 }
 0x1df   : > { %1288 = vpow2.f32 %v858_v33  ;;  %v856_v38 = vmul.f32 1.442695, %v815_v36  ;;  %v1210_v39 = vpop.f32.mrb[8].mxu1 }
 0x1e0   : > { %v1273_v40 = vpop.eup %1272  ;;  %1290 = vpow2.f32 %v854_v35  ;;  %v736_v41 = vadd.f32 %v1210_v39, %v1572_v46  ;;  %v727_v42 = vpop.f32.mrb[9].mxu1 }
 0x1e1   : > { %v1275_v43 = vpop.eup %1274  ;;  %v908_v44 = vadd.f32 1.0, %v1273_v40  ;;  %1292 = vpow2.f32 %v860_v37  ;;  %v728_v45 = vadd.f32 %v1572_v46, %v727_v42  ;;  %v1211_v47 = vpop.f32.mrb[10].mxu1 }
 0x1e2   : > { %v1277_v48 = vpop.eup %1276  ;;  %v906_v49 = vadd.f32 1.0, %v1275_v43  ;;  %1294 = vpow2.f32 %v856_v38  ;;  %v820_v50 = vsub.f32 0.0, %v736_v41  ;;  %v739_v60 = vadd.f32 %v1211_v47, %v1572_v46  ;;  %v730_v51 = vpop.f32.mrb[11].mxu1 }
 0x1e3   : > { %v1279_v52 = vpop.eup %1278  ;;  %1296 = vrcp.f32 %v908_v44  ;;  %v909_v53 = vadd.f32 1.0, %v1277_v48  ;;  %v818_v54 = vsub.f32 0.0, %v728_v45  ;;  %v731_v55 = vadd.f32 %v1572_v46, %v730_v51 }
 0x1e4   : > { %1298 = vrcp.f32 %v906_v49  ;;  %v907_v56 = vadd.f32 1.0, %v1279_v52  ;;  %v866_v57 = vmul.f32 1.442695, %v820_v50  ;;  %v821_v58 = vsub.f32 0.0, %v739_v60 }
 0x1e5   : > { %v1281_v59 = vpop.eup %1280  ;;  %1300 = vrcp.f32 %v909_v53  ;;  %v862_v61 = vmul.f32 1.442695, %v818_v54  ;;  %v819_v62 = vsub.f32 0.0, %v731_v55 }
 0x1e6   : > { %v1283_v63 = vpop.eup %1282  ;;  %969 = vst.msk [vmem:[%s1594_s8 + $0x10] sm:$0xff] %vm966_vm1, %v1281_v59  ;;  %1302 = vrcp.f32 %v907_v56  ;;  %v868_v0 = vmul.f32 1.442695, %v821_v58 }
 0x1e7   : > { %v1285_v1 = vpop.eup %1284  ;;  %967 = vst.msk [vmem:[%s1594_s8] sm:$0xff] %vm966_vm1, %v1283_v63  ;;  %1304 = vpow2.f32 %v866_v57  ;;  %v864_v2 = vmul.f32 1.442695, %v819_v62  ;;  %v1214_v3 = vpop.f32.mrb[12].mxu1 }
 0x1e8   : > { %v1287_v4 = vpop.eup %1286  ;;  %970 = vst.msk [vmem:[%s1594_s8 + $0x18] sm:$0xff] %vm966_vm1, %v1285_v1  ;;  %1306 = vpow2.f32 %v862_v61  ;;  %v752_v5 = vadd.f32 %v1214_v3, %v1572_v46  ;;  %v743_v6 = vpop.f32.mrb[13].mxu1 }
 0x1e9   : > { %v1289_v7 = vpop.eup %1288  ;;  %968 = vst.msk [vmem:[%s1594_s8 + $0x8] sm:$0xff] %vm966_vm1, %v1287_v4  ;;  %1308 = vpow2.f32 %v868_v0  ;;  %v744_v8 = vadd.f32 %v1572_v46, %v743_v6  ;;  %v1215_v9 = vpop.f32.mrb[14].mxu1 }
 0x1ea   : > { %v1291_v10 = vpop.eup %1290  ;;  %v912_v11 = vadd.f32 1.0, %v1289_v7  ;;  %1310 = vpow2.f32 %v864_v2  ;;  %v824_v12 = vsub.f32 0.0, %v752_v5  ;;  %v755_v13 = vadd.f32 %v1215_v9, %v1572_v46  ;;  %v746_v14 = vpop.f32.mrb[15].mxu1 }
 0x1eb   : > { %v1293_v15 = vpop.eup %1292  ;;  %v910_v16 = vadd.f32 1.0, %v1291_v10  ;;  %v822_v17 = vsub.f32 0.0, %v744_v8  ;;  %v747_v18 = vadd.f32 %v1572_v46, %v746_v14 }
 0x1ec   : > { %v1295_v19 = vpop.eup %1294  ;;  %1312 = vrcp.f32 %v912_v11  ;;  %v913_v20 = vadd.f32 1.0, %v1293_v15  ;;  %v874_v21 = vmul.f32 1.442695, %v824_v12  ;;  %v825_v22 = vsub.f32 0.0, %v755_v13 }
 0x1ed   : > { %v1297_v23 = vpop.eup %1296  ;;  %1314 = vrcp.f32 %v910_v16  ;;  %v911_v24 = vadd.f32 1.0, %v1295_v19  ;;  %v870_v25 = vmul.f32 1.442695, %v822_v17  ;;  %v823_v26 = vsub.f32 0.0, %v747_v18 }
 0x1ee   : > { %v1299_v27 = vpop.eup %1298  ;;  %973 = vst.msk [vmem:[%s1594_s8 + $0x30] sm:$0xff] %vm966_vm1, %v1297_v23  ;;  %1316 = vrcp.f32 %v913_v20  ;;  %v876_v28 = vmul.f32 1.442695, %v825_v22 }
 0x1ef   : > { %v1301_v29 = vpop.eup %1300  ;;  %971 = vst.msk [vmem:[%s1594_s8 + $0x20] sm:$0xff] %vm966_vm1, %v1299_v27  ;;  %1318 = vrcp.f32 %v911_v24  ;;  %v872_v30 = vmul.f32 1.442695, %v823_v26  ;;  %v1218_v31 = vpop.f32.mrb[16].mxu1 }
 0x1f0   : > { %v1303_v32 = vpop.eup %1302  ;;  %974 = vst.msk [vmem:[%s1594_s8 + $0x38] sm:$0xff] %vm966_vm1, %v1301_v29  ;;  %1320 = vpow2.f32 %v874_v21  ;;  %v768_v33 = vadd.f32 %v1218_v31, %v1572_v46  ;;  %v759_v34 = vpop.f32.mrb[17].mxu1 }
 0x1f1   : > { %v1305_v35 = vpop.eup %1304  ;;  %972 = vst.msk [vmem:[%s1594_s8 + $0x28] sm:$0xff] %vm966_vm1, %v1303_v32  ;;  %1322 = vpow2.f32 %v870_v25  ;;  %v760_v36 = vadd.f32 %v1572_v46, %v759_v34  ;;  %v1219_v37 = vpop.f32.mrb[18].mxu1 }
 0x1f2   : > { %v1307_v38 = vpop.eup %1306  ;;  %v916_v39 = vadd.f32 1.0, %v1305_v35  ;;  %1324 = vpow2.f32 %v876_v28  ;;  %v828_v40 = vsub.f32 0.0, %v768_v33  ;;  %v771_v41 = vadd.f32 %v1219_v37, %v1572_v46  ;;  %v762_v42 = vpop.f32.mrb[19].mxu1 }
 0x1f3   : > { %v1309_v43 = vpop.eup %1308  ;;  %v914_v44 = vadd.f32 1.0, %v1307_v38  ;;  %1326 = vpow2.f32 %v872_v30  ;;  %v826_v45 = vsub.f32 0.0, %v760_v36  ;;  %v763_v47 = vadd.f32 %v1572_v46, %v762_v42 }
 0x1f4   : > { %v1311_v48 = vpop.eup %1310  ;;  %1328 = vrcp.f32 %v916_v39  ;;  %v917_v49 = vadd.f32 1.0, %v1309_v43  ;;  %v882_v50 = vmul.f32 1.442695, %v828_v40  ;;  %v829_v60 = vsub.f32 0.0, %v771_v41 }
 0x1f5   : > { %1330 = vrcp.f32 %v914_v44  ;;  %v915_v51 = vadd.f32 1.0, %v1311_v48  ;;  %v878_v52 = vmul.f32 1.442695, %v826_v45  ;;  %v827_v53 = vsub.f32 0.0, %v763_v47 }
 0x1f6   : > { %v1313_v54 = vpop.eup %1312  ;;  %1332 = vrcp.f32 %v917_v49  ;;  %v884_v55 = vmul.f32 1.442695, %v829_v60 }
 0x1f7   : > { %v1315_v56 = vpop.eup %1314  ;;  %977 = vst.msk [vmem:[%s1594_s8 + $0x50] sm:$0xff] %vm966_vm1, %v1313_v54  ;;  %1334 = vrcp.f32 %v915_v51  ;;  %v880_v57 = vmul.f32 1.442695, %v827_v53  ;;  %v1222_v58 = vpop.f32.mrb[20].mxu1 }
 0x1f8   : > { %v1317_v59 = vpop.eup %1316  ;;  %975 = vst.msk [vmem:[%s1594_s8 + $0x40] sm:$0xff] %vm966_vm1, %v1315_v56  ;;  %1336 = vpow2.f32 %v882_v50  ;;  %v784_v61 = vadd.f32 %v1222_v58, %v1572_v46  ;;  %v775_v62 = vpop.f32.mrb[21].mxu1 }
 0x1f9   : > { %v1319_v63 = vpop.eup %1318  ;;  %978 = vst.msk [vmem:[%s1594_s8 + $0x58] sm:$0xff] %vm966_vm1, %v1317_v59  ;;  %1338 = vpow2.f32 %v878_v52  ;;  %v776_v0 = vadd.f32 %v1572_v46, %v775_v62  ;;  %v1223_v1 = vpop.f32.mrb[22].mxu1 }
 0x1fa   : > { %v1321_v2 = vpop.eup %1320  ;;  %976 = vst.msk [vmem:[%s1594_s8 + $0x48] sm:$0xff] %vm966_vm1, %v1319_v63  ;;  %1340 = vpow2.f32 %v884_v55  ;;  %v832_v3 = vsub.f32 0.0, %v784_v61  ;;  %v787_v4 = vadd.f32 %v1223_v1, %v1572_v46  ;;  %v778_v5 = vpop.f32.mrb[23].mxu1 }
 0x1fb   : > { %v1323_v6 = vpop.eup %1322  ;;  %v920_v7 = vadd.f32 1.0, %v1321_v2  ;;  %1342 = vpow2.f32 %v880_v57  ;;  %v830_v8 = vsub.f32 0.0, %v776_v0  ;;  %v779_v9 = vadd.f32 %v1572_v46, %v778_v5 }
 0x1fc   : > { %v1325_v10 = vpop.eup %1324  ;;  %v918_v11 = vadd.f32 1.0, %v1323_v6  ;;  %v833_v12 = vsub.f32 0.0, %v787_v4  ;;  %v890_v15 = vmul.f32 1.442695, %v832_v3 }
 0x1fd   : > { %v1327_v13 = vpop.eup %1326  ;;  %1344 = vrcp.f32 %v920_v7  ;;  %v921_v14 = vadd.f32 1.0, %v1325_v10  ;;  %v831_v16 = vsub.f32 0.0, %v779_v9  ;;  %v886_v19 = vmul.f32 1.442695, %v830_v8 }
 0x1fe   : > { %v1329_v17 = vpop.eup %1328  ;;  %1346 = vrcp.f32 %v918_v11  ;;  %v919_v18 = vadd.f32 1.0, %v1327_v13  ;;  %v892_v21 = vmul.f32 1.442695, %v833_v12 }
 0x1ff   : > { %v1331_v20 = vpop.eup %1330  ;;  %981 = vst.msk [vmem:[%s1594_s8 + $0x70] sm:$0xff] %vm966_vm1, %v1329_v17  ;;  %1348 = vrcp.f32 %v921_v14  ;;  %v1226_v22 = vpop.f32.mrb[24].mxu1  ;;  %v888_v24 = vmul.f32 1.442695, %v831_v16 }
 0x200   : > { %v1333_v23 = vpop.eup %1332  ;;  %979 = vst.msk [vmem:[%s1594_s8 + $0x60] sm:$0xff] %vm966_vm1, %v1331_v20  ;;  %1350 = vrcp.f32 %v919_v18  ;;  %v800_v25 = vadd.f32 %v1226_v22, %v1572_v46  ;;  %v791_v26 = vpop.f32.mrb[25].mxu1 }
 0x201   : > { %v1335_v27 = vpop.eup %1334  ;;  %982 = vst.msk [vmem:[%s1594_s8 + $0x78] sm:$0xff] %vm966_vm1, %v1333_v23  ;;  %1352 = vpow2.f32 %v890_v15  ;;  %v792_v28 = vadd.f32 %v1572_v46, %v791_v26  ;;  %v1227_v29 = vpop.f32.mrb[26].mxu1 }
 0x202   : > { %v1337_v30 = vpop.eup %1336  ;;  %980 = vst.msk [vmem:[%s1594_s8 + $0x68] sm:$0xff] %vm966_vm1, %v1335_v27  ;;  %1354 = vpow2.f32 %v886_v19  ;;  %v836_v31 = vsub.f32 0.0, %v800_v25  ;;  %v803_v32 = vadd.f32 %v1227_v29, %v1572_v46  ;;  %v794_v33 = vpop.f32.mrb[27].mxu1 }
 0x203   : > { %v1339_v34 = vpop.eup %1338  ;;  %v924_v35 = vadd.f32 1.0, %v1337_v30  ;;  %1356 = vpow2.f32 %v892_v21  ;;  %v834_v36 = vsub.f32 0.0, %v792_v28  ;;  %v795_v37 = vadd.f32 %v1572_v46, %v794_v33 }
 0x204   : > { %v1341_v38 = vpop.eup %1340  ;;  %v922_v39 = vadd.f32 1.0, %v1339_v34  ;;  %1358 = vpow2.f32 %v888_v24  ;;  %v837_v40 = vsub.f32 0.0, %v803_v32  ;;  %v898_v43 = vmul.f32 1.442695, %v836_v31 }
 0x205   : > { %v1343_v41 = vpop.eup %1342  ;;  %1360 = vrcp.f32 %v924_v35  ;;  %v925_v42 = vadd.f32 1.0, %v1341_v38  ;;  %v835_v44 = vsub.f32 0.0, %v795_v37  ;;  %v894_v47 = vmul.f32 1.442695, %v834_v36 }
 0x206   : > { %1362 = vrcp.f32 %v922_v39  ;;  %v923_v45 = vadd.f32 1.0, %v1343_v41  ;;  %v900_v49 = vmul.f32 1.442695, %v837_v40 }
 0x207   : > { %v1345_v48 = vpop.eup %1344  ;;  %1364 = vrcp.f32 %v925_v42  ;;  %v896_v50 = vmul.f32 1.442695, %v835_v44 }
 0x208   : > { %v1347_v46 = vpop.eup %1346  ;;  %985 = vst.msk [vmem:[%s1594_s8 + $0x90] sm:$0xff] %vm966_vm1, %v1345_v48  ;;  %1366 = vrcp.f32 %v923_v45 }
 0x209   : > { %v1349_v60 = vpop.eup %1348  ;;  %983 = vst.msk [vmem:[%s1594_s8 + $0x80] sm:$0xff] %vm966_vm1, %v1347_v46  ;;  %1368 = vpow2.f32 %v898_v43 }
 0x20a   : > { %v1351_v51 = vpop.eup %1350  ;;  %986 = vst.msk [vmem:[%s1594_s8 + $0x98] sm:$0xff] %vm966_vm1, %v1349_v60  ;;  %1370 = vpow2.f32 %v894_v47 }
 0x20b   : > { %v1353_v52 = vpop.eup %1352  ;;  %984 = vst.msk [vmem:[%s1594_s8 + $0x88] sm:$0xff] %vm966_vm1, %v1351_v51  ;;  %1372 = vpow2.f32 %v900_v49 }
 0x20c   : > { %v1355_v53 = vpop.eup %1354  ;;  %v928_v54 = vadd.f32 1.0, %v1353_v52  ;;  %1374 = vpow2.f32 %v896_v50 }
 0x20d   : > { %v1357_v55 = vpop.eup %1356  ;;  %v926_v56 = vadd.f32 1.0, %v1355_v53 }
 0x20e   : > { %v1359_v57 = vpop.eup %1358  ;;  %1376 = vrcp.f32 %v928_v54  ;;  %v929_v58 = vadd.f32 1.0, %v1357_v55 }
 0x20f   : > { %v1361_v59 = vpop.eup %1360  ;;  %1378 = vrcp.f32 %v926_v56  ;;  %v927_v61 = vadd.f32 1.0, %v1359_v57 }
 0x210   : > { %v1363_v62 = vpop.eup %1362  ;;  %989 = vst.msk [vmem:[%s1594_s8 + $0xb0] sm:$0xff] %vm966_vm1, %v1361_v59  ;;  %1380 = vrcp.f32 %v929_v58 }
 0x211   : > { %v1365_v63 = vpop.eup %1364  ;;  %987 = vst.msk [vmem:[%s1594_s8 + $0xa0] sm:$0xff] %vm966_vm1, %v1363_v62  ;;  %1382 = vrcp.f32 %v927_v61 }
 0x212   : > { %v1367_v0 = vpop.eup %1366  ;;  %990 = vst.msk [vmem:[%s1594_s8 + $0xb8] sm:$0xff] %vm966_vm1, %v1365_v63 }
 0x213   : > { %v1369_v1 = vpop.eup %1368  ;;  %988 = vst.msk [vmem:[%s1594_s8 + $0xa8] sm:$0xff] %vm966_vm1, %v1367_v0 }
 0x214   : > { %v1371_v2 = vpop.eup %1370  ;;  %v932_v3 = vadd.f32 1.0, %v1369_v1 }
 0x215   : > { %v1373_v4 = vpop.eup %1372  ;;  %v930_v5 = vadd.f32 1.0, %v1371_v2 }
 0x216   : > { %v1375_v6 = vpop.eup %1374  ;;  %1384 = vrcp.f32 %v932_v3  ;;  %v933_v7 = vadd.f32 1.0, %v1373_v4 }
 0x217   : > { %1386 = vrcp.f32 %v930_v5  ;;  %v931_v8 = vadd.f32 1.0, %v1375_v6 }
 0x218   : > { %v1377_v9 = vpop.eup %1376  ;;  %1388 = vrcp.f32 %v933_v7 }
 0x219   : > { %v1379_v10 = vpop.eup %1378  ;;  %993 = vst.msk [vmem:[%s1594_s8 + $0xd0] sm:$0xff] %vm966_vm1, %v1377_v9  ;;  %1390 = vrcp.f32 %v931_v8 }
 0x21a   : > { %v1381_v11 = vpop.eup %1380  ;;  %991 = vst.msk [vmem:[%s1594_s8 + $0xc0] sm:$0xff] %vm966_vm1, %v1379_v10 }
 0x21b   : > { %v1383_v12 = vpop.eup %1382  ;;  %994 = vst.msk [vmem:[%s1594_s8 + $0xd8] sm:$0xff] %vm966_vm1, %v1381_v11 }
 0x21c   : > { %992 = vst.msk [vmem:[%s1594_s8 + $0xc8] sm:$0xff] %vm966_vm1, %v1383_v12 }
 0x220   : > { %v1385_v13 = vpop.eup %1384 }
 0x221   : > { %v1387_v14 = vpop.eup %1386  ;;  %997 = vst.msk [vmem:[%s1594_s8 + $0xf0] sm:$0xff] %vm966_vm1, %v1385_v13 }
 0x222   : > { %v1389_v15 = vpop.eup %1388  ;;  %995 = vst.msk [vmem:[%s1594_s8 + $0xe0] sm:$0xff] %vm966_vm1, %v1387_v14 }
 0x223   : > { %v1391_v16 = vpop.eup %1390  ;;  %998 = vst.msk [vmem:[%s1594_s8 + $0xf8] sm:$0xff] %vm966_vm1, %v1389_v15 }
 0x224   : > { %996 = vst.msk [vmem:[%s1594_s8 + $0xe8] sm:$0xff] %vm966_vm1, %v1391_v16 }
 0x225 PF: > { %s15_s18 = sadd.s32 1, %s1398_s18  }
 0x226   : > { %p12_p4 = scmp.ge.s32.totalorder %s15_s18, 4  }
 0x228   :  { %14 = sbr.rel (!%p12_p4) target bundleno = 1 (0x1), region = 70 }

</bundles_post_ra>
